<compile_context>
chip_gen: v5e
topology: v5e:2x2
jax: 0.10.0
libtpu: 0.0.40
codegen_flags: <defaults>
</compile_context>

<pallas_src>
import functools

import jax
import jax.numpy as jnp
from jax import lax
from jax.experimental import pallas as pl
from jax.experimental.pallas import tpu as pltpu

_LANE = 128
_FUSED_VMEM_BUDGET = 8 * 1024 * 1024    # per-batch resident slab budget (fused path)
_TILED_VMEM_BUDGET = 12 * 1024 * 1024   # under v5e's 16 MiB default scoped VMEM
_MAX_TILE_N = 2048


def _round_up(v, m):
    return (v + m - 1) // m * m


def _softmax_neg_energy(energy):
    # softmax(rowmax(E) - E) == exp(rowmin(E) - E) / row_sum  (one reduction).
    p = jnp.exp(jnp.min(energy, axis=-1, keepdims=True) - energy)
    return p / jnp.sum(p, axis=-1, keepdims=True)   # exact division for parity


# ----------------------------------------------------------------------------
# Fused single-pass kernel: whole (C, N) slab resident per batch.
# ----------------------------------------------------------------------------
def _fused_kernel(gamma_ref, x_ref, o_ref, *, precision):
    x = x_ref[0]                                              # (C, N), native dtype
    energy = lax.dot_general(                                 # X @ X^T (contract lanes)
        x, x, (((1,), (1,)), ((), ())),
        precision=precision, preferred_element_type=jnp.float32)
    attn = _softmax_neg_energy(energy)                        # (C, C) f32
    out = lax.dot_general(                                    # A @ X
        attn.astype(x.dtype), x, (((1,), (0,)), ((), ())),
        precision=precision, preferred_element_type=jnp.float32)
    o_ref[0] = (gamma_ref[0] * out + x.astype(jnp.float32)).astype(o_ref.dtype)


# ----------------------------------------------------------------------------
# Two-phase tiled path.
# ----------------------------------------------------------------------------
def _gram_softmax_kernel(x_ref, attn_ref, *, n_total, tile_n, precision):
    """Grid (B, num_n_tiles), N axis last / "arbitrary". Accumulate X @ X^T over
    N tiles into the resident (C, C) f32 output block, then convert it in place
    to the channel-attention matrix on the last tile."""
    n = pl.program_id(1)

    x = x_ref[0]                                              # (C, tile_n)
    if n_total % tile_n != 0:
        # Ragged last tile: padded lane contents are unspecified -> zero them
        # before they enter the contraction. No-op for full tiles.
        col = n * tile_n + lax.broadcasted_iota(jnp.int32, x.shape, 1)
        x = jnp.where(col < n_total, x, jnp.zeros_like(x))

    # Contract the shared lane-major axis (A @ A^T / trans-B matmul).
    prod = lax.dot_general(x, x, (((1,), (1,)), ((), ())),
                           precision=precision,
                           preferred_element_type=jnp.float32)

    @pl.when(n == 0)
    def _first():        # write directly: skip the zero-init read-modify-write
        attn_ref[0] = prod

    @pl.when(n > 0)
    def _accumulate():
        attn_ref[0] = attn_ref[0] + prod

    @pl.when(n == pl.num_programs(1) - 1)
    def _finalize():
        attn_ref[0] = _softmax_neg_energy(attn_ref[0])


def _apply_kernel(gamma_ref, attn_ref, x_ref, o_ref, *, precision):
    """Grid (B, num_n_tiles), fully parallel: out_tile = gamma*(A @ x_tile) + x_tile."""
    x = x_ref[0]                                              # (C, tile_n)
    out = lax.dot_general(attn_ref[0].astype(x.dtype), x, (((1,), (0,)), ((), ())),
                          precision=precision,
                          preferred_element_type=jnp.float32)
    o_ref[0] = (gamma_ref[0] * out + x.astype(jnp.float32)).astype(o_ref.dtype)


def _pick_tile_n(C, N, itemsize, tile_n):
    if tile_n is not None:
        return min(max(_LANE, _round_up(tile_n, _LANE)), _round_up(N, _LANE))
    tn = min(_round_up(N, _LANE), _MAX_TILE_N)

    # Phase-2 resident estimate: double-buffered x + out tiles, f32 temporaries,
    # double-buffered (C, C) f32 attention block.
    def est(t):
        return C * t * (4 * itemsize + 8) + 8 * C * C

    while tn > _LANE and est(tn) > _TILED_VMEM_BUDGET:
        tn -= _LANE
    return tn


# ----------------------------------------------------------------------------
# Wrapper.
# ----------------------------------------------------------------------------
def cam_module_3d(x, gamma, *, tile_n=None, force_two_phase=False):
    """x: (B, C, H, W, D); gamma: scalar parameter. Returns gamma*(A @ X) + x."""
    B, C, H, W, D = x.shape
    N = H * W * D
    itemsize = jnp.dtype(x.dtype).itemsize
    # f32 inputs: accurate MXU path (parity with an f32 reference). bf16 inputs:
    # native single-pass bf16 MXU.
    precision = (lax.Precision.HIGHEST if x.dtype == jnp.float32
                 else lax.Precision.DEFAULT)
    gamma_arr = jnp.asarray(gamma, dtype=jnp.float32).reshape(1)

    def _fused(x_flat):
        return pl.pallas_call(
            functools.partial(_fused_kernel, precision=precision),
            out_shape=jax.ShapeDtypeStruct((B, C, N), x.dtype),
            grid_spec=pltpu.PrefetchScalarGridSpec(
                num_scalar_prefetch=0,
                grid=(B,),
                in_specs=[
                    pl.BlockSpec(memory_space=pltpu.SMEM),             # gamma
                    pl.BlockSpec((1, C, N), lambda b: (b, 0, 0)),      # x slab
                ],
                out_specs=pl.BlockSpec((1, C, N), lambda b: (b, 0, 0)),
            ),
            compiler_params=pltpu.CompilerParams(
                dimension_semantics=("parallel",)),
            cost_estimate=pl.CostEstimate(
                flops=4 * B * C * C * N + 2 * B * C * N,
                transcendentals=B * C * C,
                bytes_accessed=2 * B * C * N * itemsize + 4 * B * C * C),
        )(gamma_arr, x_flat)

    def _two_phase(x_flat):
        tn = _pick_tile_n(C, N, itemsize, tile_n)
        num_tiles = pl.cdiv(N, tn)

        # Phase 1: attention = softmax(rowmax(X X^T) - X X^T), tiled over N.
        attn = pl.pallas_call(
            functools.partial(_gram_softmax_kernel,
                              n_total=N, tile_n=tn, precision=precision),
            out_shape=jax.ShapeDtypeStruct((B, C, C), jnp.float32),
            grid_spec=pltpu.PrefetchScalarGridSpec(
                num_scalar_prefetch=0,
                grid=(B, num_tiles),
                in_specs=[pl.BlockSpec((1, C, tn), lambda b, n: (b, 0, n))],
                out_specs=pl.BlockSpec((1, C, C), lambda b, n: (b, 0, 0)),
            ),
            compiler_params=pltpu.CompilerParams(
                dimension_semantics=("parallel", "arbitrary")),
            cost_estimate=pl.CostEstimate(
                flops=2 * B * C * C * N,
                transcendentals=B * C * C,
                bytes_accessed=B * C * N * itemsize + 4 * B * C * C),
        )(x_flat)

        # Phase 2: out = gamma * (attention @ X) + X, streamed per lane-dense N tile.
        return pl.pallas_call(
            functools.partial(_apply_kernel, precision=precision),
            out_shape=jax.ShapeDtypeStruct((B, C, N), x.dtype),
            grid_spec=pltpu.PrefetchScalarGridSpec(
                num_scalar_prefetch=0,
                grid=(B, num_tiles),
                in_specs=[
                    pl.BlockSpec(memory_space=pltpu.SMEM),             # gamma
                    pl.BlockSpec((1, C, C), lambda b, n: (b, 0, 0)),   # attention
                    pl.BlockSpec((1, C, tn), lambda b, n: (b, 0, n)),  # x tile
                ],
                out_specs=pl.BlockSpec((1, C, tn), lambda b, n: (b, 0, n)),
            ),
            compiler_params=pltpu.CompilerParams(
                dimension_semantics=("parallel", "parallel")),
            cost_estimate=pl.CostEstimate(
                flops=2 * B * C * C * N + 3 * B * C * N,
                transcendentals=0,
                bytes_accessed=2 * B * C * N * itemsize + 4 * B * C * C),
        )(gamma_arr, attn, x_flat)

    def _attend():
        x_flat = x.reshape(B, C, N)
        fused_bytes = C * N * (4 * itemsize + 8) + 16 * C * C
        if (not force_two_phase) and fused_bytes <= _FUSED_VMEM_BUDGET:
            out_flat = _fused(x_flat)
        else:
            out_flat = _two_phase(x_flat)
        return out_flat.reshape(B, C, H, W, D)

    def _identity():
        return x

    # gamma == 0 is the PyTorch init: out == x exactly. Hoisted fast path skips
    # all HBM traffic and MXU work (previously still ran Gram+softmax+copy).
    try:
        concrete_gamma = float(gamma)
    except (TypeError, jax.errors.ConcretizationTypeError):
        concrete_gamma = None
    if concrete_gamma is not None:
        return _identity() if concrete_gamma == 0.0 else _attend()
    return lax.cond(gamma_arr[0] != 0.0, _attend, _identity)


# ----------------------------------------------------------------------------
# Pure-JAX reference (accurate f32 matmuls) mirroring the PyTorch forward.
# ----------------------------------------------------------------------------
def _reference(x, gamma):
    B, C, H, W, D = x.shape
    hp = lax.Precision.HIGHEST
    xf = x.reshape(B, C, -1).astype(jnp.float32)
    energy = jnp.einsum("bcn,bdn->bcd", xf, xf, precision=hp)
    e_new = jnp.max(energy, axis=-1, keepdims=True) - energy
    attn = jax.nn.softmax(e_new, axis=-1)
    out = jnp.einsum("bcd,bdn->bcn", attn, xf, precision=hp).reshape(B, C, H, W, D)
    return (gamma * out + x.astype(jnp.float32)).astype(x.dtype)


if __name__ == "__main__":
    key = jax.random.PRNGKey(0)

    # Small shapes consistent with the module (B, C, H, W, D).
    B, C, H, W, D = 2, 4, 8, 8, 8
    x = jax.random.normal(key, (B, C, H, W, D), dtype=jnp.float32)

    # gamma = 0.0 is the PyTorch init (wrapper-level identity fast path); a
    # nonzero gamma exercises the fused attention kernel.
    for gamma in (0.0, 0.5):
        out = jax.block_until_ready(cam_module_3d(x, gamma))
        ref = _reference(x, jnp.float32(gamma))
        assert out.shape == x.shape
        assert jnp.allclose(out, ref, atol=2e-3, rtol=2e-3), "fused path mismatch"

    # Exercise the two-phase tiled path with a ragged last N tile (N = 315).
    x2 = jax.random.normal(jax.random.PRNGKey(0), (2, 8, 5, 7, 9), dtype=jnp.float32)
    out2 = jax.block_until_ready(
        cam_module_3d(x2, 0.5, tile_n=128, force_two_phase=True))
    ref2 = _reference(x2, jnp.float32(0.5))
    assert jnp.allclose(out2, ref2, atol=2e-3, rtol=2e-3), "tiled path mismatch"

    print("KERNEL_OK")
</pallas_src>

<mosaic_0001>
module attributes {stable_mosaic.version = 11 : i64} {
  func.func @_fused_kernel(%arg0: i32, %arg1: memref<1xf32, #tpu.memory_space<smem>>, %arg2: memref<1x4x512xf32, #tpu.memory_space<vmem>>, %arg3: memref<1x4x512xf32, #tpu.memory_space<vmem>>) attributes {dimension_semantics = [#tpu.dimension_semantics<parallel>], iteration_bounds = array<i64: 2>, scalar_prefetch = 0 : i64, scratch_operands = 0 : i64, tpu.core_type = #tpu.core_type<tc>, window_params = [{transform_indices = @transform_0, window_bounds = array<i64: 1>}, {transform_indices = @transform_1, window_bounds = array<i64: 1, 4, 512>}, {transform_indices = @transform_2, window_bounds = array<i64: 1, 4, 512>}]} {
    %c0 = arith.constant 0 : index
    %c0_0 = arith.constant 0 : index
    %c0_1 = arith.constant 0 : index
    %0 = vector.load %arg2[%c0, %c0_0, %c0_1] : memref<1x4x512xf32, #tpu.memory_space<vmem>>, vector<1x4x512xf32>
    %1 = vector.shape_cast %0 : vector<1x4x512xf32> to vector<4x512xf32>
    %cst = arith.constant dense<0.000000e+00> : vector<4x4xf32>
    %2 = tpu.matmul %1, %1, %cst {dimension_numbers = #tpu.dot_dimension_numbers<[1], [1], [0], [0], [0, 0, 1, 0], [], []>, precision = #tpu.contract_precision<fp32>} : vector<4x512xf32>, vector<4x512xf32>, vector<4x4xf32> -> vector<4x4xf32>
    %cst_2 = arith.constant dense<0x7F800000> : vector<4xf32>
    %3 = vector.multi_reduction <minimumf>, %2, %cst_2 [1] : vector<4x4xf32> to vector<4xf32>
    %4 = vector.shape_cast %3 : vector<4xf32> to vector<4x1xf32>
    %5 = vector.broadcast %4 : vector<4x1xf32> to vector<4x4xf32>
    %6 = arith.subf %5, %2 : vector<4x4xf32>
    %7 = math.exp %6 : vector<4x4xf32>
    %cst_3 = arith.constant dense<0.000000e+00> : vector<4xf32>
    %8 = vector.multi_reduction <add>, %7, %cst_3 [1] : vector<4x4xf32> to vector<4xf32>
    %9 = vector.shape_cast %8 : vector<4xf32> to vector<4x1xf32>
    %10 = vector.broadcast %9 : vector<4x1xf32> to vector<4x4xf32>
    %11 = arith.divf %7, %10 : vector<4x4xf32>
    %cst_4 = arith.constant dense<0.000000e+00> : vector<4x512xf32>
    %12 = tpu.matmul %11, %1, %cst_4 {dimension_numbers = #tpu.dot_dimension_numbers<[1], [0], [0], [1], [0, 0, 1, 1], [], []>, precision = #tpu.contract_precision<fp32>} : vector<4x4xf32>, vector<4x512xf32>, vector<4x512xf32> -> vector<4x512xf32>
    %c0_5 = arith.constant 0 : index
    %13 = memref.load %arg1[%c0_5] : memref<1xf32, #tpu.memory_space<smem>>
    %14 = vector.broadcast %13 : f32 to vector<4x512xf32>
    %15 = arith.mulf %14, %12 : vector<4x512xf32>
    %16 = arith.addf %15, %1 : vector<4x512xf32>
    %c0_6 = arith.constant 0 : index
    %c0_7 = arith.constant 0 : index
    %c0_8 = arith.constant 0 : index
    %17 = vector.load %arg3[%c0_6, %c0_7, %c0_8] : memref<1x4x512xf32, #tpu.memory_space<vmem>>, vector<1x4x512xf32>
    %18 = vector.shape_cast %17 : vector<1x4x512xf32> to vector<4x512xf32>
    %19 = vector.shape_cast %16 : vector<4x512xf32> to vector<1x4x512xf32>
    tpu.vector_store %arg3[%c0_6, %c0_7, %c0_8], %19 {strides = array<i32>} : memref<1x4x512xf32, #tpu.memory_space<vmem>>, vector<1x4x512xf32>,
    return
  }
  func.func @transform_0(%arg0: i32) -> i32 {
    %c0_i32 = arith.constant 0 : i32
    %c0_i32_0 = arith.constant 0 : i32
    return %c0_i32 : i32
  }
  func.func @transform_1(%arg0: i32) -> (i32, i32, i32) {
    %c0_i32 = arith.constant 0 : i32
    %c0_i32_0 = arith.constant 0 : i32
    %c0_i32_1 = arith.constant 0 : i32
    return %arg0, %c0_i32, %c0_i32_0 : i32, i32, i32
  }
  func.func @transform_2(%arg0: i32) -> (i32, i32, i32) {
    %c0_i32 = arith.constant 0 : i32
    %c0_i32_0 = arith.constant 0 : i32
    %c0_i32_1 = arith.constant 0 : i32
    return %arg0, %c0_i32, %c0_i32_0 : i32, i32, i32
  }
}

</mosaic_0001>

<bundles_post_ra>
// kernel: tpu_custom_call.1
= control target key start
LH: loop header
LB: loop body
LE: loop exit
PB: predicated region body
PF: predicated region fallthrough
CT: control target
= control target key end

     0   :  { %s1879_s0 = inlined_call_operand.<no memory space> [shape: f32[1], index: 0, kind: input, shape index: {}]   ;;  %s1880_s1 = inlined_call_operand.hbm [shape: f32[2,4,512], index: 1, kind: input, shape index: {}]   ;;  %s1881_s2 = inlined_call_operand.hbm [shape: f32[2,4,512], index: 2, kind: output, shape index: {}]  }
   0x1   :  { %7 = sst [smem:[#allocation2]] %s1879_s0 }
   0x2   :  { %8 = vsyncpa [#allocation4], 0 }
   0x3   :  { %10 = vsyncpa [#allocation4 + $0x1], 0 }
   0x4   :  { %11 = vsyncpa [#allocation5], 0 }
   0x5   :  { %13 = vsyncpa [#allocation5 + $0x1], 0  ;;  %s1704_s11 = smov 0   ;;  %s1706_s12 = smov 0  }
   0x6   :  { %s1708_s13 = smov 0   ;;  %s1710_s14 = smov 0  }
   0x7 LB: > { %s1725_s0 = sadd.s32 4294967295, %s1684_s14   ;;  %s1522_s15 = sadd.s32 4294967294, %s1684_s14   ;;  %s1684_s14 = sphi %s1710_s14, %s1891_s14   ;;  %s1680_s13 = sphi %s1708_s13, %s1890_s13   ;;  %s1676_s12 = sphi %s1706_s12, %s1889_s12   ;;  %s1672_s11 = sphi %s1704_s11, %s1888_s11  }
   0x8   : > { %s1729_s16 = sadd.s32 1, %s1684_s14   ;;  %s47_s17 = sadd.s32 1, %s1680_s13 }
   0x9   : > { %s44_s18 = ssub.s32 %s1684_s14, %s1729_s16  ;;  %p54_p0 = scmp.ne.s32.totalorder %s1680_s13, %s1676_s12 }
   0xa   : > { %p45_p1 = scmp.eq.s32.totalorder %s44_s18, 0  ;;  %p55_p2 = scmp.eq.s32.totalorder %s1684_s14, 0 }
   0xb   : > { %p60_p3 = scmp.ne.s32.totalorder %s1676_s12, %s1672_s11  ;;  %p61_p4 = scmp.eq.s32.totalorder %s1725_s0, 0 }
   0xc   : > { %s1741_s19 = scalar_select %p45_p1, %s1680_s13, %s47_s17  }
   0xd   : > { %p1743_p5 = por %p55_p2, %p54_p0  ;;  %p1747_p6 = por %p61_p4, %p60_p3 }
   0xe   : > { %p84_p7 = scmp.eq.s32.totalorder %s1725_s0, 1  ;;  %p90_p8 = scmp.eq.s32.totalorder %s1522_s15, 1 }
   0xf   : > { %p1550_p10 = scmp.lt.s32.totalorder %s1684_s14, 2  ;;  %s113_s24 = sand.u32 1, %s1680_s13  }
  0x10   : > { %p1754_p11 = por %p84_p7, %p54_p0  ;;  %p1758_p12 = por %p90_p8, %p60_p3 }
  0x11   : > { %s1536_s25 = sshll.u32 %s1684_s14, 4  ;;  %s1525_s26 = sshll.u32 %s113_s24, 4 }
  0x12   : > { %s122_s29 = scalar_lea.hbm %s1880_s1, %s1536_s25  ;;  %s117_s3 = scalar_lea.vmem [#allocation3], %s1525_s26 }
  0x13   : > { %s124_s30 = sshll.u32 %s122_s29, 4  ;;  %s126_s4 = sshll.u32 %s117_s3, 4  ;;  %s125_s30 = int_to_ptr.hbm [resolvable:$true] %s124_s30  ;;  %s127_s4 = int_to_ptr.vmem [resolvable:$true] %s126_s4 }
  0x14   : > { %p1769_p13 = pnand %p1550_p10, %p1743_p5  ;;  %p1528_p0 = scmp.ge.s32.totalorder %s1684_s14, 1 }
  0x15   : > { %p131_p1 = scmp.lt.s32.totalorder %s1684_s14, 3  ;;  %s114_s6 = scalar_lea.sflag [#allocation4], %s113_s24 }
  0x16   : > { %s1588_s7 = sshra.s32 %s125_s30, 4  ;;  %p1592_p3 = pneg %p1769_p13  ;;  %s1589_s7 = int_to_ptr.hbm [resolvable:$true] %s1588_s7 }
  0x17   : > { %s1590_s8 = scalar_lea.hbm %s1589_s7, 16  ;;  %s1595_s15 = scalar_lea.hbm %s1880_s1, 32 }
  0x18   : > { %p1591_p2 = scmp.ne.s32.totalorder %s1589_s7, %s1590_s8  ;;  %p1596_p5 = scmp.lt.s32.totalorder %s1589_s7, %s1880_s1 }
  0x19   : > { %p1597_p8 = scmp.lt.s32.totalorder %s1595_s15, %s1590_s8 }
  0x1a   : > { %p1593_p4 = pnand %p1592_p3, %p1591_p2 }
  0x1b   : > { %p1598_p10 = por %p1597_p8, %p1596_p5 }
  0x1c   : > { %p1594_p7 = pneg %p1593_p4 }
  0x1e   : > { %p1599_p9 = pnand %p1598_p10, %p1594_p7 }
  0x20   : > { %1602 = shalt.err (!%p1599_p9)
}
  0x21   : > { %1545 = dma.hbm_to_vmem [thread:$0]  (!%p1769_p13), %s125_s30, 256, %s127_s4, %s114_s6  }
  0x22   : > { %p132_p2 = pnand %p1528_p0, %p131_p1 }
  0x23   : > { %s1790_s20 = sand.u32 (!%p132_p2), 1, %s1676_s12  }
  0x24   : > { %135 = sbr.rel (%p132_p2) target bundleno = 703 (0x2bf), region = 28  ;;  %s1529_s24 = sshll.u32 (!%p132_p2), %s1790_s20, 4 }
  0x25   : > { %s138_s25 = scalar_lea.sflag (!%p132_p2), [#allocation4], %s1790_s20  ;;  %s141_s26 = scalar_lea.vmem (!%p132_p2), [#allocation3], %s1529_s24 }
  0x29   : > { %1663 = dma.done.wait (%p1747_p6), %s138_s25, 256  }
  0x2a   : > { %1665 = vsyncadd (%p1747_p6), %s138_s25, 4294967040  ;;  %v1800_v0 = vld [vmem:[%s141_s26] sm:$0xff]  ;;  %v1802_v1 = vld [vmem:[%s141_s26 + $0x8] sm:$0xff]  ;;  %vm773_vm0 = vcmask 27648   ;;  %vm809_vm1 = vcmask 1043456   ;;  %vm805_vm6 = vcmask 31744  }
  0x2b   : > { %167 = vst [vmem:[#allocation1] ss:$2 sm:$0xff] %v1800_v0  ;;  %s1402_s21 = sld [smem:[#allocation2]]  ;;  %s1840_s27 = scalar_lea.vmem [#allocation6], %s1529_s24 }
  0x2c   : > { %169 = vst [vmem:[#allocation1 + $0x10] ss:$2 sm:$0xff] %v1802_v1  ;;  %s1537_s28 = sshll.u32 %s1725_s0, 4  ;;  %s1449_s4 = sshll.u32 %s1840_s27, 4  ;;  %s1450_s4 = int_to_ptr.vmem [resolvable:$true] %s1449_s4 }
  0x2d   : > { %s1447_s3 = scalar_lea.hbm %s1881_s2, %s1537_s28  ;;  %s1436_s0 = scalar_lea.sflag [#allocation5], %s1790_s20 }
  0x2e   : > { %s1451_s5 = sshll.u32 %s1447_s3, 4  ;;  %s1638_s10 = scalar_lea.hbm %s1881_s2, 32  ;;  %s1452_s5 = int_to_ptr.hbm [resolvable:$true] %s1451_s5 }
  0x2f   : > { %s1632_s6 = sshra.s32 %s1452_s5, 4  ;;  %s1633_s6 = int_to_ptr.hbm [resolvable:$true] %s1632_s6 }
  0x30   : > { %s1634_s7 = scalar_lea.hbm %s1633_s6, 16  ;;  %p1639_p0 = scmp.lt.s32.totalorder %s1633_s6, %s1881_s2 }
  0x31   : > { %p1635_p6 = scmp.ne.s32.totalorder %s1633_s6, %s1634_s7  ;;  %p1640_p1 = scmp.lt.s32.totalorder %s1638_s10, %s1634_s7 }
  0x32   : > { %v170_v2 = vld.sshfl [vmem:[#allocation1] sm:$0xff pattern:$0x75316420]  ;;  %v171_v3 = vld.sshfl [vmem:[#allocation1 + $0x8] sm:$0xff pattern:$0x75316420] }
  0x33   : > { %178 = vst [vmem:[#allocation1] ss:$2 sm:$0xff] %v1800_v0  ;;  %v1807_v4 = vand.u32 4294901760, %v170_v2  ;;  %v172_v5 = vld.sshfl [vmem:[#allocation1 + $0x10] sm:$0xff pattern:$0x75316420]  ;;  %p1636_p9 = pnand %p1635_p6, %p1754_p11  ;;  %p1641_p3 = por %p1640_p1, %p1639_p0 }
  0x34   : > { %v1809_v6 = vld.sshfl [vmem:[#allocation1 + $0x18] sm:$0xff pattern:$0x75316420]  ;;  %v1813_v8 = vand.u32 4294901760, %v171_v3  ;;  %v498_v33 = vand.u32 4294901760, %v172_v5 }
  0x35   : > { %v207_v7 = vsub.f32 %v170_v2, %v1807_v4  ;;  %180 = vst [vmem:[#allocation1 + $0x10] ss:$2 sm:$0xff] %v1802_v1  ;;  %v644_v42 = vand.u32 4294901760, %v1809_v6  ;;  %p1637_p13 = pneg %p1636_p9 }
  0x36   : > { %v1816_v13 = vsub.f32 %v171_v3, %v1813_v8  ;;  %v499_v37 = vsub.f32 %v172_v5, %v498_v33 }
  0x37   : > { %v208_v9 = vand.u32 4294901760, %v207_v7  ;;  %v645_v45 = vsub.f32 %v1809_v6, %v644_v42  ;;  %p1642_p4 = pnand %p1641_p3, %p1637_p13 }
  0x38   : > { %v354_v22 = vand.u32 4294901760, %v1816_v13  ;;  %v500_v40 = vand.u32 4294901760, %v499_v37 }
  0x39   : > { %v209_v10 = vsub.f32 %v207_v7, %v208_v9  ;;  %v646_v47 = vand.u32 4294901760, %v645_v45 }
  0x3a   : > { %v181_v11 = vld.sshfl [vmem:[#allocation1] sm:$0xff pattern:$0x75316420]  ;;  %v182_v12 = vld.sshfl [vmem:[#allocation1 + $0x8] sm:$0xff pattern:$0x75316420]  ;;  %v355_v29 = vsub.f32 %v1816_v13, %v354_v22  ;;  %v501_v44 = vsub.f32 %v499_v37, %v500_v40 }
  0x3b   : > { %v204_v14 = vand.u32 4294901760, %v181_v11  ;;  %v350_v15 = vand.u32 4294901760, %v182_v12  ;;  %798 = vst [vmem:[#allocation1] ss:$2 sm:$0xff] %v1800_v0  ;;  %v210_v16 = vand.u32 4294901760, %v209_v10  ;;  %v647_v48 = vsub.f32 %v645_v45, %v646_v47 }
  0x3c   : > { %v183_v17 = vld.sshfl [vmem:[#allocation1 + $0x10] sm:$0xff pattern:$0x75316420]  ;;  %v184_v18 = vld.sshfl [vmem:[#allocation1 + $0x18] sm:$0xff pattern:$0x75316420] }
  0x3d   : > { %v231_v19 = vsub.f32 %v181_v11, %v204_v14  ;;  %205 = vmatpush.xpose.msra.mxu0 %v204_v14  ;;  %281 = vmatpush.xpose.msra.mxu3 %v204_v14  ;;  %v377_v20 = vsub.f32 %v182_v12, %v350_v15  ;;  %v496_v21 = vand.u32 4294901760, %v183_v17  ;;  %800 = vst [vmem:[#allocation1 + $0x10] ss:$2 sm:$0xff] %v1802_v1  ;;  %v642_v25 = vand.u32 4294901760, %v184_v18 }
  0x3e   : > { %v356_v35 = vand.u32 4294901760, %v355_v29  ;;  %v502_v46 = vand.u32 4294901760, %v501_v44  ;;  %v648_v49 = vand.u32 4294901760, %v647_v48 }
  0x3f   : > { %258 = vmatpush.xpose.msra.mxu2 %v231_v19  ;;  %v232_v23 = vand.u32 4294901760, %v231_v19  ;;  %v378_v24 = vand.u32 4294901760, %v377_v20  ;;  %v523_v28 = vsub.f32 %v183_v17, %v496_v21  ;;  %v669_v32 = vsub.f32 %v184_v18, %v642_v25 }
  0x40   : > { %211 = vmatmul.f32.vlgmr.msra.gmra.mxu0 %v210_v16  ;;  %285 = vmatmul.f32.vlgmr.msra.gmra.mxu3 %v208_v9 }
  0x41   : > { %v233_v26 = vsub.f32 %v231_v19, %v232_v23  ;;  %307 = vmatpush.xpose.msrb.mxu0 %v232_v23  ;;  %v379_v27 = vsub.f32 %v377_v20, %v378_v24  ;;  %v524_v34 = vand.u32 4294901760, %v523_v28  ;;  %v670_v36 = vand.u32 4294901760, %v669_v32 }
  0x42   : > { %261 = vmatmul.f32.vlgmr.msra.gmra.mxu2 %v207_v7  ;;  %v802_v48 = vld.sshfl [vmem:[#allocation1 + $0x8] sm:$0xff pattern:$0x75316420] }
  0x43   : > { %351 = vmatpush.xpose.msrb.mxu2 %v350_v15  ;;  %v234_v30 = vand.u32 4294901760, %v233_v26  ;;  %v380_v31 = vand.u32 4294901760, %v379_v27  ;;  %v525_v38 = vsub.f32 %v523_v28, %v524_v34  ;;  %v671_v39 = vsub.f32 %v669_v32, %v670_v36 }
  0x45   : > { %404 = vmatpush.xpose.msra.mxu0 %v377_v20  ;;  %235 = vmatpush.xpose.msra.mxu1 %v234_v30  ;;  %v526_v41 = vand.u32 4294901760, %v525_v38  ;;  %v672_v43 = vand.u32 4294901760, %v671_v39 }
  0x46   : > { %381 = vmatpush.xpose.msrb.mxu3 %v380_v31 }
  0x47   : > { %453 = vmatpush.xpose.msra.mxu2 %v378_v24 }
  0x48   : > { %237 = vmatmul.f32.vlgmr.msra.gmra.mxu1 %v1807_v4  ;;  %309 = vmatmul.f32.vlgmr.msrb.gmra.mxu0 %v1807_v4 }
  0x49   : > { %329 = vmatpush.xpose.msrb.mxu1 %v204_v14  ;;  %383 = vmatmul.f32.vlgmr.msrb.gmra.mxu3 %v1813_v8 }
  0x4a   : > { %475 = vmatpush.xpose.msra.mxu3 %v350_v15  ;;  %357 = vmatmul.f32.vlgmr.msrb.gmra.mxu2 %v356_v35 }
  0x4b   : > { %497 = vmatpush.xpose.msrb.mxu0 %v496_v21  ;;  %550 = vmatpush.xpose.msrb.mxu2 %v523_v28 }
  0x4d   : > { %427 = vmatpush.xpose.msra.mxu1 %v350_v15 }
  0x4e   : > { %573 = vmatpush.xpose.msrb.mxu3 %v496_v21 }
  0x50   : > { %331 = vmatmul.f32.vlgmr.msrb.gmra.mxu1 %v1807_v4  ;;  %407 = vmatmul.f32.vlgmr.msra.gmra.mxu0 %v1816_v13 }
  0x51   : > { %477 = vmatmul.f32.vlgmr.msra.gmra.mxu3 %v1813_v8  ;;  %527 = vmatpush.xpose.msrb.mxu1 %v526_v41  ;;  %v801_v41 = vld.sshfl [vmem:[#allocation1] sm:$0xff pattern:$0x75316420] }
  0x52   : > { %455 = vmatmul.f32.vlgmr.msra.gmra.mxu2 %v1813_v8  ;;  %599 = vmatpush.xpose.msra.mxu0 %v524_v34  ;;  %1408 = vst [vmem:[#allocation1] ss:$2 sm:$0xff] %v1800_v0 }
  0x53   : > { %643 = vmatpush.xpose.msra.mxu2 %v642_v25  ;;  %673 = vmatpush.xpose.msra.mxu3 %v672_v43 }
  0x58   : > { %431 = vmatmul.f32.vlgmr.msra.gmra.mxu1 %v354_v22  ;;  %503 = vmatmul.f32.vlgmr.msrb.gmra.mxu0 %v502_v46 }
  0x59   : > { %577 = vmatmul.f32.vlgmr.msrb.gmra.mxu3 %v500_v40  ;;  %621 = vmatpush.xpose.msra.mxu1 %v496_v21 }
  0x5a   : > { %553 = vmatmul.f32.vlgmr.msrb.gmra.mxu2 %v499_v37  ;;  %696 = vmatpush.xpose.msrb.mxu0 %v669_v32 }
  0x5b   : > { %745 = vmatpush.xpose.msrb.mxu2 %v670_v36  ;;  %767 = vmatpush.xpose.msrb.mxu3 %v642_v25 }
  0x60   : > { %529 = vmatmul.f32.vlgmr.msrb.gmra.mxu1 %v498_v33  ;;  %601 = vmatmul.f32.vlgmr.msra.gmra.mxu0 %v498_v33 }
  0x61   : > { %675 = vmatmul.f32.vlgmr.msra.gmra.mxu3 %v644_v42  ;;  %719 = vmatpush.xpose.msrb.mxu1 %v642_v25 }
  0x62   : > { %649 = vmatmul.f32.vlgmr.msra.gmra.mxu2 %v648_v49  ;;  %v812_v49 = vsel %vm809_vm1, %v802_v48, 0 }
  0x68   : > { %623 = vmatmul.f32.vlgmr.msra.gmra.mxu1 %v498_v33  ;;  %699 = vmatmul.f32.vlgmr.msrb.gmra.mxu0 %v645_v45 }
  0x69   : > { %769 = vmatmul.f32.vlgmr.msrb.gmra.mxu3 %v644_v42 }
  0x6a   : > { %747 = vmatmul.f32.vlgmr.msrb.gmra.mxu2 %v644_v42  ;;  %v810_v42 = vsel %vm809_vm1, %v801_v41, 0 }
  0x6b   : > { %v833_v43 = vand.u32 4294901760, %v810_v42 }
  0x6d   : > { %v860_v44 = vsub.f32 %v810_v42, %v833_v43  ;;  %834 = vmatpush.msra.mxu0 %v833_v43  ;;  %910 = vmatpush.msra.mxu3 %v833_v43 }
  0x6f   : > { %887 = vmatpush.msra.mxu2 %v860_v44  ;;  %v861_v45 = vand.u32 4294901760, %v860_v44 }
  0x70   : > { %723 = vmatmul.f32.vlgmr.msrb.gmra.mxu1 %v646_v47 }
  0x71   : > { %v862_v46 = vsub.f32 %v860_v44, %v861_v45  ;;  %936 = vmatpush.msrb.mxu0 %v861_v45  ;;  %v1403_v44 = vstv %s1402_s21 }
  0x73   : > { %v863_v47 = vand.u32 4294901760, %v862_v46 }
  0x75   : > { %864 = vmatpush.msra.mxu1 %v863_v47  ;;  %v1412_v47 = vld.sshfl [vmem:[#allocation1 + $0x8] sm:$0xff pattern:$0x75316420] }
  0x77   : > { %958 = vmatpush.msrb.mxu1 %v833_v43 }
  0xbd   : > { %v212_v50 = vpop.f32.mrf.mxu0 }
  0xc3   : > { %v286_v51 = vpop.f32.mrf.mxu3 }
  0xc5   : > { %v238_v52 = vpop.f32.mrf.mxu1  ;;  %v262_v53 = vpop.f32.mrf.mxu2 }
  0xc6   : > { %v239_v54 = vadd.f32 %v238_v52, %v212_v50  ;;  %v310_v55 = vpop.f32.mrf.mxu0  ;;  %v979_v50 = vand.u32 4294901760, %v812_v49 }
  0xc8   : > { %v263_v56 = vadd.f32 %v262_v53, %v239_v54  ;;  %980 = vmatpush.msrb.mxu2 %v979_v50 }
  0xca   : > { %v287_v57 = vadd.f32 %v286_v51, %v263_v56  ;;  %v1006_v51 = vsub.f32 %v812_v49, %v979_v50  ;;  %v803_v56 = vld.sshfl [vmem:[#allocation1 + $0x10] sm:$0xff pattern:$0x75316420] }
  0xcc   : > { %v311_v58 = vadd.f32 %v310_v55, %v287_v57  ;;  %v384_v59 = vpop.f32.mrf.mxu3  ;;  %v1007_v52 = vand.u32 4294901760, %v1006_v51 }
  0xcd   : > { %v332_v60 = vpop.f32.mrf.mxu1  ;;  %v358_v61 = vpop.f32.mrf.mxu2 }
  0xce   : > { %v333_v62 = vadd.f32 %v332_v60, %v311_v58  ;;  %v408_v63 = vpop.f32.mrf.mxu0  ;;  %v1008_v53 = vsub.f32 %v1006_v51, %v1007_v52 }
  0xd0   : > { %v359_v2 = vadd.f32 %v358_v61, %v333_v62  ;;  %v1009_v55 = vand.u32 4294901760, %v1008_v53 }
  0xd2   : > { %v385_v3 = vadd.f32 %v384_v59, %v359_v2  ;;  %1010 = vmatpush.msrb.mxu3 %v1009_v55  ;;  %v814_v59 = vsel %vm809_vm1, %v803_v56, 0 }
  0xd4   : > { %v409_v4 = vadd.f32 %v408_v63, %v385_v3  ;;  %v478_v5 = vpop.f32.mrf.mxu3  ;;  %v1125_v63 = vand.u32 4294901760, %v814_v59  ;;  %v804_v3 = vld.sshfl [vmem:[#allocation1 + $0x18] sm:$0xff pattern:$0x75316420] }
  0xd5   : > { %v432_v6 = vpop.f32.mrf.mxu1  ;;  %v456_v7 = vpop.f32.mrf.mxu2  ;;  %1410 = vst [vmem:[#allocation1 + $0x10] ss:$2 sm:$0xff] %v1802_v1 }
  0xd6   : > { %v433_v8 = vadd.f32 %v432_v6, %v409_v4  ;;  %v504_v9 = vpop.f32.mrf.mxu0  ;;  %v1152_v6 = vsub.f32 %v814_v59, %v1125_v63 }
  0xd8   : > { %v457_v10 = vadd.f32 %v456_v7, %v433_v8 }
  0xda   : > { %v479_v11 = vadd.f32 %v478_v5, %v457_v10  ;;  %v1153_v10 = vand.u32 4294901760, %v1152_v6 }
  0xdc   : > { %v505_v12 = vadd.f32 %v504_v9, %v479_v11  ;;  %v578_v13 = vpop.f32.mrf.mxu3 }
  0xdd   : > { %v530_v14 = vpop.f32.mrf.mxu1  ;;  %v554_v15 = vpop.f32.mrf.mxu2 }
  0xde   : > { %v531_v16 = vadd.f32 %v530_v14, %v505_v12  ;;  %v602_v17 = vpop.f32.mrf.mxu0  ;;  %v816_v12 = vsel %vm809_vm1, %v804_v3, 0  ;;  %v1154_v14 = vsub.f32 %v1152_v6, %v1153_v10 }
  0xe0   : > { %v555_v18 = vadd.f32 %v554_v15, %v531_v16  ;;  %v1271_v15 = vand.u32 4294901760, %v816_v12 }
  0xe2   : > { %v579_v19 = vadd.f32 %v578_v13, %v555_v18  ;;  %v1298_v18 = vsub.f32 %v816_v12, %v1271_v15 }
  0xe4   : > { %v603_v20 = vadd.f32 %v602_v17, %v579_v19  ;;  %v676_v21 = vpop.f32.mrf.mxu3  ;;  %v1155_v17 = vand.u32 4294901760, %v1154_v14 }
  0xe5   : > { %v624_v22 = vpop.f32.mrf.mxu1  ;;  %v650_v23 = vpop.f32.mrf.mxu2 }
  0xe6   : > { %v625_v24 = vadd.f32 %v624_v22, %v603_v20  ;;  %v700_v26 = vpop.f32.mrf.mxu0  ;;  %v1299_v20 = vand.u32 4294901760, %v1298_v18 }
  0xe8   : > { %v651_v25 = vadd.f32 %v650_v23, %v625_v24 }
  0xea   : > { %v677_v27 = vadd.f32 %v676_v21, %v651_v25  ;;  %v1300_v21 = vsub.f32 %v1298_v18, %v1299_v20 }
  0xec   : > { %v701_v28 = vadd.f32 %v700_v26, %v677_v27  ;;  %v770_v32 = vpop.f32.mrf.mxu3  ;;  %v1301_v22 = vand.u32 4294901760, %v1300_v21 }
  0xed   : > { %v724_v29 = vpop.f32.mrf.mxu1  ;;  %v748_v30 = vpop.f32.mrf.mxu2 }
  0xee   : > { %v725_v31 = vadd.f32 %v724_v29, %v701_v28 }
  0xf0   : > { %v749_v33 = vadd.f32 %v748_v30, %v725_v31 }
  0xf2   : > { %v771_v34 = vadd.f32 %v770_v32, %v749_v33 }
  0xf4   : > { %v774_v35 = vsel %vm773_vm0, %v771_v34, inf }
  0xf5   : > { %775 = vmin.xlane.f32.xlu0 %v774_v35 }
 0x168   : > { %v776_v36 = vpop.xlane.xlu0 %775 }
 0x169   : > { %v777_v37 = vsub.f32 %v776_v36, %v771_v34 }
 0x16b   : > { %v778_v38 = vmul.f32 1.442695, %v777_v37 }
 0x16d   : > { %1584 = vpow2.f32 %v778_v38 }
 0x173   : > { %v1585_v39 = vpop.eup %1584 }
 0x174   : > { %v780_v40 = vsel %vm773_vm0, %v1585_v39, 0.0 }
 0x175   : > { %781 = vadd.xlane.f32.xlu0 %v780_v40 }
 0x1e8   : > { %v782_v54 = vpop.xlane.xlu0 %781 }
 0x1e9   : > { %1586 = vrcp.f32 %v782_v54  ;;  %v794_v61 = vand.u32 2147483648, %v782_v54  ;;  %v792_v0 = vand.u32 2147483647, %v782_v54  ;;  %vm788_vm3 = vweird.f32 %v782_v54 }
 0x1eb   : > { %v795_v4 = vor.u32 1.1754944e-38, %v794_v61  ;;  %vm793_vm5 = vcmp.eq.f32.partialorder %v792_v0, 8.507059e+37 }
 0x1ef   : > { %v1587_v57 = vpop.eup %1586 }
 0x1f0   : > { %v784_v58 = vmul.f32 %v1587_v57, %v782_v54  ;;  %vm789_vm2 = vweird.f32 %v1587_v57 }
 0x1f1   : > { %vm790_vm4 = vmor %vm788_vm3, %vm789_vm2 }
 0x1f2   : > { %v785_v60 = vsub.f32 1.0, %v784_v58 }
 0x1f4   : > { %v786_v62 = vmul.f32 %v1587_v57, %v785_v60 }
 0x1f6   : > { %v787_v2 = vadd.f32 %v1587_v57, %v786_v62 }
 0x1f8   : > { %v791_v5 = vsel %vm790_vm4, %v1587_v57, %v787_v2 }
 0x1f9   : > { %v796_v7 = vsel %vm793_vm5, %v795_v4, %v791_v5 }
 0x1fa   : > { %v797_v8 = vmul.f32 %v1585_v39, %v796_v7 }
 0x1fc   : > { %v807_v9 = vsel %vm805_vm6, %v797_v8, 0 }
 0x1fd   : > { %v835_v11 = vand.u32 4294901760, %v807_v9 }
 0x1ff   : > { %v836_v13 = vsub.f32 %v807_v9, %v835_v11  ;;  %866 = vmatmul.f32.vlgmr.msra.gmra.mxu1 %v835_v11 }
 0x200   : > { %1056 = vmatpush.msra.mxu1 %v979_v50 }
 0x201   : > { %890 = vmatmul.f32.vlgmr.msra.gmra.mxu2 %v836_v13  ;;  %v837_v16 = vand.u32 4294901760, %v836_v13 }
 0x202   : > { %1082 = vmatpush.msra.mxu2 %v1007_v52  ;;  %v1411_v52 = vld.sshfl [vmem:[#allocation1] sm:$0xff pattern:$0x75316420] }
 0x203   : > { %914 = vmatmul.f32.vlgmr.msra.gmra.mxu3 %v837_v16  ;;  %v838_v1 = vsub.f32 %v836_v13, %v837_v16 }
 0x204   : > { %1104 = vmatpush.msra.mxu3 %v979_v50 }
 0x205   : > { %v839_v19 = vand.u32 4294901760, %v838_v1 }
 0x207   : > { %840 = vmatmul.f32.vlgmr.msra.gmra.mxu0 %v839_v19  ;;  %960 = vmatmul.f32.vlgmr.msrb.gmra.mxu1 %v835_v11 }
 0x208   : > { %1033 = vmatpush.msra.mxu0 %v1006_v51  ;;  %1156 = vmatpush.msrb.mxu1 %v1155_v17 }
 0x209   : > { %986 = vmatmul.f32.vlgmr.msrb.gmra.mxu2 %v839_v19 }
 0x20a   : > { %1179 = vmatpush.msrb.mxu2 %v1152_v6 }
 0x20b   : > { %1012 = vmatmul.f32.vlgmr.msrb.gmra.mxu3 %v835_v11 }
 0x20c   : > { %1202 = vmatpush.msrb.mxu3 %v1125_v63 }
 0x20f   : > { %938 = vmatmul.f32.vlgmr.msrb.gmra.mxu0 %v835_v11  ;;  %1060 = vmatmul.f32.vlgmr.msra.gmra.mxu1 %v837_v16 }
 0x210   : > { %1126 = vmatpush.msrb.mxu0 %v1125_v63  ;;  %1250 = vmatpush.msra.mxu1 %v1125_v63 }
 0x211   : > { %1084 = vmatmul.f32.vlgmr.msra.gmra.mxu2 %v835_v11 }
 0x212   : > { %1272 = vmatpush.msra.mxu2 %v1271_v15 }
 0x213   : > { %1106 = vmatmul.f32.vlgmr.msra.gmra.mxu3 %v835_v11 }
 0x214   : > { %1302 = vmatpush.msra.mxu3 %v1301_v22 }
 0x217   : > { %1036 = vmatmul.f32.vlgmr.msra.gmra.mxu0 %v836_v13  ;;  %1158 = vmatmul.f32.vlgmr.msrb.gmra.mxu1 %v835_v11 }
 0x218   : > { %1228 = vmatpush.msra.mxu0 %v1153_v10  ;;  %1348 = vmatpush.msrb.mxu1 %v1271_v15 }
 0x219   : > { %1182 = vmatmul.f32.vlgmr.msrb.gmra.mxu2 %v836_v13 }
 0x21a   : > { %1374 = vmatpush.msrb.mxu2 %v1299_v20 }
 0x21b   : > { %1206 = vmatmul.f32.vlgmr.msrb.gmra.mxu3 %v837_v16 }
 0x21c   : > { %1396 = vmatpush.msrb.mxu3 %v1271_v15 }
 0x21f   : > { %1132 = vmatmul.f32.vlgmr.msrb.gmra.mxu0 %v839_v19  ;;  %1252 = vmatmul.f32.vlgmr.msra.gmra.mxu1 %v835_v11 }
 0x220   : > { %1325 = vmatpush.msrb.mxu0 %v1298_v18 }
 0x221   : > { %1278 = vmatmul.f32.vlgmr.msra.gmra.mxu2 %v839_v19 }
 0x223   : > { %1304 = vmatmul.f32.vlgmr.msra.gmra.mxu3 %v835_v11 }
 0x227   : > { %1230 = vmatmul.f32.vlgmr.msra.gmra.mxu0 %v835_v11  ;;  %1352 = vmatmul.f32.vlgmr.msrb.gmra.mxu1 %v837_v16  ;;  %v1413_v16 = vld.sshfl [vmem:[#allocation1 + $0x10] sm:$0xff pattern:$0x75316420] }
 0x229   : > { %1376 = vmatmul.f32.vlgmr.msrb.gmra.mxu2 %v835_v11 }
 0x22b   : > { %1398 = vmatmul.f32.vlgmr.msrb.gmra.mxu3 %v835_v11 }
 0x22f   : > { %1328 = vmatmul.f32.vlgmr.msrb.gmra.mxu0 %v836_v13  ;;  %v1414_v13 = vld.sshfl [vmem:[#allocation1 + $0x18] sm:$0xff pattern:$0x75316420] }
 0x27c   : > { %v867_v23 = vpop.f32.mrf.mxu1 }
 0x284   : > { %v841_v24 = vpop.f32.mrf.mxu0  ;;  %v891_v25 = vpop.f32.mrf.mxu2 }
 0x285   : > { %v961_v26 = vpop.f32.mrf.mxu1  ;;  %v868_v28 = vadd.f32 %v867_v23, %v841_v24 }
 0x286   : > { %v915_v27 = vpop.f32.mrf.mxu3 }
 0x287   : > { %v892_v32 = vadd.f32 %v891_v25, %v868_v28 }
 0x289   : > { %v916_v34 = vadd.f32 %v915_v27, %v892_v32 }
 0x28c   : > { %v939_v29 = vpop.f32.mrf.mxu0  ;;  %v987_v30 = vpop.f32.mrf.mxu2 }
 0x28d   : > { %v1061_v33 = vpop.f32.mrf.mxu1  ;;  %v940_v38 = vadd.f32 %v939_v29, %v916_v34 }
 0x28e   : > { %v1013_v31 = vpop.f32.mrf.mxu3 }
 0x28f   : > { %v1014_v35 = vadd.f32 %v1013_v31, %v987_v30  ;;  %v962_v42 = vadd.f32 %v961_v26, %v940_v38 }
 0x291   : > { %v1404_v50 = vmul.f32 %v1403_v44, %v962_v42 }
 0x293   : > { %v1419_v55 = vadd.f32 %v1411_v52, %v1404_v50 }
 0x294   : > { %v1037_v36 = vpop.f32.mrf.mxu0  ;;  %v1085_v37 = vpop.f32.mrf.mxu2 }
 0x295   : > { %v1038_v39 = vadd.f32 %v1037_v36, %v1014_v35  ;;  %v1159_v45 = vpop.f32.mrf.mxu1 }
 0x296   : > { %v1107_v40 = vpop.f32.mrf.mxu3 }
 0x297   : > { %v1062_v41 = vadd.f32 %v1061_v33, %v1038_v39 }
 0x299   : > { %v1086_v43 = vadd.f32 %v1085_v37, %v1062_v41 }
 0x29b   : > { %v1108_v46 = vadd.f32 %v1107_v40, %v1086_v43 }
 0x29c   : > { %v1133_v48 = vpop.f32.mrf.mxu0  ;;  %v1183_v49 = vpop.f32.mrf.mxu2 }
 0x29d   : > { %v1405_v51 = vmul.f32 %v1403_v44, %v1108_v46  ;;  %v1160_v58 = vadd.f32 %v1159_v45, %v1133_v48  ;;  %v1253_v59 = vpop.f32.mrf.mxu1 }
 0x29e   : > { %v1207_v53 = vpop.f32.mrf.mxu3 }
 0x29f   : > { %v1420_v54 = vadd.f32 %v1412_v47, %v1405_v51  ;;  %v1184_v62 = vadd.f32 %v1183_v49, %v1160_v58 }
 0x2a1   : > { %v1427_v56 = vrot.slane %v1420_v54, 4  ;;  %v1208_v63 = vadd.f32 %v1207_v53, %v1184_v62 }
 0x2a3   : > { %v1429_v57 = vsel %vm809_vm1, %v1419_v55, %v1427_v56 }
 0x2a4   : > { %v1231_v60 = vpop.f32.mrf.mxu0  ;;  %1433 = vst [vmem:[%s1840_s27] sm:$0xff] %v1429_v57  ;;  %v1279_v61 = vpop.f32.mrf.mxu2 }
 0x2a5   : > { %v1232_v4 = vadd.f32 %v1231_v60, %v1208_v63  ;;  %v1353_v6 = vpop.f32.mrf.mxu1 }
 0x2a6   : > { %v1305_v0 = vpop.f32.mrf.mxu3 }
 0x2a7   : > { %v1306_v2 = vadd.f32 %v1305_v0, %v1279_v61  ;;  %v1254_v9 = vadd.f32 %v1253_v59, %v1232_v4 }
 0x2a9   : > { %v1406_v14 = vmul.f32 %v1403_v44, %v1254_v9 }
 0x2ab   : > { %v1421_v17 = vadd.f32 %v1413_v16, %v1406_v14 }
 0x2ac   : > { %v1329_v3 = vpop.f32.mrf.mxu0  ;;  %v1377_v8 = vpop.f32.mrf.mxu2 }
 0x2ad   : > { %v1330_v5 = vadd.f32 %v1329_v3, %v1306_v2 }
 0x2ae   : > { %v1399_v11 = vpop.f32.mrf.mxu3 }
 0x2af   : > { %v1354_v7 = vadd.f32 %v1353_v6, %v1330_v5 }
 0x2b1   : > { %v1378_v10 = vadd.f32 %v1377_v8, %v1354_v7 }
 0x2b3   : > { %v1400_v12 = vadd.f32 %v1399_v11, %v1378_v10 }
 0x2b5   : > { %v1407_v15 = vmul.f32 %v1403_v44, %v1400_v12 }
 0x2b7   : > { %v1422_v1 = vadd.f32 %v1414_v13, %v1407_v15 }
 0x2b9   : > { %v1428_v18 = vrot.slane %v1422_v1, 4 }
 0x2bb   : > { %v1430_v19 = vsel %vm809_vm1, %v1421_v17, %v1428_v18 }
 0x2bc   : > { %1434 = vst [vmem:[%s1840_s27 + $0x8] sm:$0xff] %v1430_v19 }
 0x2bd   : > { %1645 = shalt.err (!%p1642_p4)
}
 0x2be   : > { %1540 = dma.vmem_to_hbm [thread:$0]  (%p1754_p11), %s1450_s4, 256, %s1452_s5, %s1436_s0  }
 0x2bf PF: > { %s1463_s18 = sand.u32 1, %s1672_s11   ;;  %p1887_p7 = scmp.ge.s32.totalorder %s1684_s14, 2 }
 0x2c0   : > { %s1464_s20 = scalar_lea.sflag [#allocation5], %s1463_s18 }
 0x2c1   : > { %p1547_p5 = pnand %p1887_p7, %p1758_p12 }
 0x2c3   : > { %p1548_p8 = pneg %p1547_p5 }
 0x2c5   : > { %1667 = dma.done.wait (%p1548_p8), %s1464_s20, 256  }
 0x2c6   : > { %1669 = vsyncadd (%p1548_p8), %s1464_s20, 4294967040  ;;  %p16_p10 = scmp.ge.s32.totalorder %s1729_s16, 4   ;;  %s1888_s11 = smov %s1676_s12 }
 0x2c7   : > { %s1889_s12 = smov %s1680_s13  ;;  %s1890_s13 = smov %s1741_s19 }
 0x2c8   : > { %s1891_s14 = smov %s1729_s16  ;;  %18 = sbr.rel (!%p16_p10) target bundleno = 7 (0x7), region = 77 }
 0x2cd   :  { %1470 = vsyncpa [#allocation4], 1 }
 0x2ce   :  { %1472 = vsyncpa [#allocation4 + $0x1], 1 }
 0x2cf   :  { %1473 = vsyncpa [#allocation5], 1 }
 0x2d0   :  { %1475 = vsyncpa [#allocation5 + $0x1], 1 }

</bundles_post_ra>
